<compile_context>
chip_gen: v5e
topology: v5e:2x2
jax: 0.10.0
libtpu: 0.0.40
codegen_flags: <defaults>
</compile_context>

<pallas_src>
import functools

import jax
import jax.numpy as jnp
from jax import lax
from jax.experimental import pallas as pl
from jax.experimental.pallas import tpu as pltpu


# --------------------------------------------------------------------------- #
# Kernel
# --------------------------------------------------------------------------- #
def _margin_cosine_kernel(x_ref, wt_ref, sinvx_ref, invw_ref, lab_ref, o_ref,
                          *, sm, tc):
    # x_ref:     (tb, D)  native dtype (bf16/f32) -- MXU operand
    # wt_ref:    (D, tc)  native dtype            -- MXU operand (pre-transposed W)
    # sinvx_ref: (tb, 1)  f32, precomputed s / ||x_row||
    # invw_ref:  (1, tc)  f32, precomputed 1 / ||W_row||
    # lab_ref:   (tb, 1)  int32 label indices (global)
    # o_ref:     (tb, tc) output tile
    ip = jnp.dot(x_ref[...], wt_ref[...], preferred_element_type=jnp.float32)

    # s * cosine  (s folded into the hoisted x inverse-norm)
    out = ip * sinvx_ref[...] * invw_ref[...]                    # two broadcast muls

    # Margin via local column-id compare against the tile-shifted label index.
    col = lax.broadcasted_iota(jnp.int32, out.shape, 1)          # (tb, tc), local ids
    lab_local = lab_ref[...] - pl.program_id(0) * tc             # (tb, 1) scalar shift
    out = jnp.where(col == lab_local, out - sm, out)             # single select

    o_ref[...] = out.astype(o_ref.dtype)


# --------------------------------------------------------------------------- #
# Wrapper
# --------------------------------------------------------------------------- #
def _round_up(a, b):
    return (a + b - 1) // b * b


def _vmem_capacity_bytes():
    try:
        info = pltpu.get_tpu_info()
        cap = getattr(info, "vmem_capacity_bytes", None)
        if cap:
            return int(cap)
    except Exception:
        pass
    return 64 * 1024 * 1024  # conservative fallback (v7x per-TensorCore)


def _select_tiles(B, C, D, x_isz, w_isz, o_isz, tb, tc, tile_budget):
    # bf16 packs 16 rows per sublane group (f32: 8, int8/fp8: 32).
    b_unit = max(8, 32 // x_isz)
    b_full = _round_up(B, b_unit)
    c_full = _round_up(C, 128)

    def step_bytes(tb_, tc_):
        return (2 * tb_ * D * x_isz          # double-buffered x tile
                + 2 * D * tc_ * w_isz        # double-buffered W^T tile
                + 2 * tb_ * tc_ * o_isz      # double-buffered output tile
                + tb_ * tc_ * 4              # f32 epilogue temporary
                + 4 * tb_ * 4 + 4 * tc_ * 4)  # (tb,1)/(1,tc) side streams

    if tb is None:
        # tb ~ B (capped) so each weight byte is streamed from HBM ~once per call.
        tb = min(b_full, 512)
    tb = max(b_unit, min(_round_up(tb, b_unit), b_full))

    if tc is None:
        tc = min(c_full, 2048)
        while tc > 128 and step_bytes(tb, tc) > tile_budget:
            tc -= 128
    tc = max(128, min(_round_up(tc, 128), c_full))

    while tb > b_unit and step_bytes(tb, tc) > tile_budget:
        tb = max(b_unit, _round_up(tb // 2, b_unit))

    return tb, tc


def margin_cosine_product(x, weight, label, *, s=30.0, m=0.4, eps=1e-8,
                          tb=None, tc=None, out_dtype=None,
                          vmem_limit_bytes=None):
    """Pallas CosFace forward.

    x:      (B, D)  feature vectors (bf16 or f32)
    weight: (C, D)  class weight matrix
    label:  (B,) int class indices, or a (B, C) one-hot (PyTorch-style) tensor.
    Returns (B, C) logits in `out_dtype` (default: x.dtype; pass float32 when
    comparing against an f32 reference or feeding a sensitive loss).
    """
    B, D = x.shape
    C, D2 = weight.shape
    assert D == D2, "x and weight must share in_features"

    out_dtype = out_dtype or x.dtype

    if label.ndim == 2:  # PyTorch forward passes a one-hot tensor
        assert label.shape == (B, C)
        label = jnp.argmax(label, axis=1)
    label = label.astype(jnp.int32)

    # ---- hoisted norm factors (computed once per call, f32) ------------------
    xf32 = x.astype(jnp.float32)
    s_inv_x = (float(s) * lax.rsqrt(
        jnp.maximum(jnp.sum(xf32 * xf32, axis=1), eps * eps))).reshape(B, 1)

    wf32 = weight.astype(jnp.float32)
    inv_w = lax.rsqrt(
        jnp.maximum(jnp.sum(wf32 * wf32, axis=1), eps * eps)).reshape(1, C)

    # One-time wrapper transpose: MXU contracts (tb,D) x (D,tc) natively.
    w_t = weight.T  # (D, C)

    # ---- per-chip VMEM budget & tile selection -------------------------------
    vmem_cap = _vmem_capacity_bytes()
    if vmem_limit_bytes is None:
        vmem_limit_bytes = min(int(vmem_cap * 0.8), 100 * 1024 * 1024)
    tile_budget = int(vmem_limit_bytes * 0.6)

    x_isz = jnp.dtype(x.dtype).itemsize
    w_isz = jnp.dtype(weight.dtype).itemsize
    o_isz = jnp.dtype(out_dtype).itemsize
    tb, tc = _select_tiles(B, C, D, x_isz, w_isz, o_isz, tb, tc, tile_budget)

    # ---- pad to tile multiples (sliced off at the end) ------------------------
    Bp, Cp = _round_up(B, tb), _round_up(C, tc)
    if Bp != B:
        x = jnp.pad(x, ((0, Bp - B), (0, 0)))
        s_inv_x = jnp.pad(s_inv_x, ((0, Bp - B), (0, 0)))
        label = jnp.pad(label, (0, Bp - B), constant_values=-1)
    if Cp != C:
        w_t = jnp.pad(w_t, ((0, 0), (0, Cp - C)))
        inv_w = jnp.pad(inv_w, ((0, 0), (0, Cp - C)))
    label = label.reshape(Bp, 1)

    # ---- launch ---------------------------------------------------------------
    # Grid: C tiles outer (slow) / B tiles inner (fast) -> the larger (D, tc)
    # weight tile is the resident operand; x / norms are re-streamed.
    grid = (Cp // tc, Bp // tb)
    kernel = functools.partial(_margin_cosine_kernel,
                               sm=float(s) * float(m), tc=tc)

    out = pl.pallas_call(
        kernel,
        out_shape=jax.ShapeDtypeStruct((Bp, Cp), out_dtype),
        grid_spec=pltpu.PrefetchScalarGridSpec(
            num_scalar_prefetch=0,
            grid=grid,
            in_specs=[
                pl.BlockSpec((tb, D), lambda j, i: (i, 0)),   # x tile
                pl.BlockSpec((D, tc), lambda j, i: (0, j)),   # W^T tile
                pl.BlockSpec((tb, 1), lambda j, i: (i, 0)),   # s / ||x|| column
                pl.BlockSpec((1, tc), lambda j, i: (0, j)),   # 1 / ||W|| row
                pl.BlockSpec((tb, 1), lambda j, i: (i, 0)),   # label indices
            ],
            out_specs=pl.BlockSpec((tb, tc), lambda j, i: (i, j)),
        ),
        compiler_params=pltpu.CompilerParams(
            dimension_semantics=("parallel", "parallel"),
            vmem_limit_bytes=int(vmem_limit_bytes),
        ),
    )(x, w_t, s_inv_x, inv_w, label)

    if Bp != B or Cp != C:
        out = out[:B, :C]
    return out


# --------------------------------------------------------------------------- #
# Reference & demo
# --------------------------------------------------------------------------- #
def _reference(x, weight, one_hot, s, m, eps=1e-8):
    xf = x.astype(jnp.float32)
    wf = weight.astype(jnp.float32)
    ip = xf @ wf.T
    w1 = jnp.linalg.norm(xf, axis=1)
    w2 = jnp.linalg.norm(wf, axis=1)
    cosine = ip / jnp.maximum(jnp.outer(w1, w2), eps)
    return s * (cosine - one_hot * m)


if __name__ == "__main__":
    key = jax.random.PRNGKey(0)
    k_x, k_w, k_lab = jax.random.split(key, 3)

    B = 64            # batch
    in_features = 256
    out_features = 512
    s_scale, margin = 30.0, 0.4

    # Deterministic xavier_uniform-style init for weight (out_features, in_features).
    bound = (6.0 / (in_features + out_features)) ** 0.5
    weight = jax.random.uniform(
        k_w, (out_features, in_features), jnp.float32, -bound, bound
    ).astype(jnp.bfloat16)
    x = jax.random.normal(k_x, (B, in_features), jnp.float32).astype(jnp.bfloat16)

    label_idx = jax.random.randint(k_lab, (B,), 0, out_features, dtype=jnp.int32)
    one_hot = jax.nn.one_hot(label_idx, out_features, dtype=jnp.float32)

    out = margin_cosine_product(x, weight, label_idx, s=s_scale, m=margin)
    out = jax.block_until_ready(out)

    ref = _reference(x, weight, one_hot, s_scale, margin)

    assert out.shape == (B, out_features)
    assert jnp.allclose(out.astype(jnp.float32), ref, atol=0.3, rtol=3e-2), (
        float(jnp.max(jnp.abs(out.astype(jnp.float32) - ref)))
    )

    print("KERNEL_OK")
</pallas_src>

<mosaic_0001>
module attributes {stable_mosaic.version = 11 : i64} {
  func.func @_margin_cosine_kernel(%arg0: i32, %arg1: i32, %arg2: memref<64x256xbf16, #tpu.memory_space<vmem>>, %arg3: memref<256x512xbf16, #tpu.memory_space<vmem>>, %arg4: memref<64x1xf32, #tpu.memory_space<vmem>>, %arg5: memref<1x512xf32, #tpu.memory_space<vmem>>, %arg6: memref<64x1xi32, #tpu.memory_space<vmem>>, %arg7: memref<64x512xbf16, #tpu.memory_space<vmem>>) attributes {dimension_semantics = [#tpu.dimension_semantics<parallel>, #tpu.dimension_semantics<parallel>], iteration_bounds = array<i64: 1, 1>, scalar_prefetch = 0 : i64, scratch_operands = 0 : i64, tpu.core_type = #tpu.core_type<tc>, window_params = [{transform_indices = @transform_0, window_bounds = array<i64: 64, 256>}, {transform_indices = @transform_1, window_bounds = array<i64: 256, 512>}, {transform_indices = @transform_2, window_bounds = array<i64: 64, 1>}, {transform_indices = @transform_3, window_bounds = array<i64: 1, 512>}, {transform_indices = @transform_4, window_bounds = array<i64: 64, 1>}, {transform_indices = @transform_5, window_bounds = array<i64: 64, 512>}]} {
    %c0 = arith.constant 0 : index
    %c0_0 = arith.constant 0 : index
    %0 = vector.load %arg2[%c0, %c0_0] : memref<64x256xbf16, #tpu.memory_space<vmem>>, vector<64x256xbf16>
    %c0_1 = arith.constant 0 : index
    %c0_2 = arith.constant 0 : index
    %1 = vector.load %arg3[%c0_1, %c0_2] : memref<256x512xbf16, #tpu.memory_space<vmem>>, vector<256x512xbf16>
    %cst = arith.constant dense<0.000000e+00> : vector<64x512xf32>
    %2 = tpu.matmul %0, %1, %cst {dimension_numbers = #tpu.dot_dimension_numbers<[1], [0], [0], [1], [0, 0, 1, 1], [], []>} : vector<64x256xbf16>, vector<256x512xbf16>, vector<64x512xf32> -> vector<64x512xf32>
    %c0_3 = arith.constant 0 : index
    %c0_4 = arith.constant 0 : index
    %3 = vector.load %arg4[%c0_3, %c0_4] : memref<64x1xf32, #tpu.memory_space<vmem>>, vector<64x1xf32>
    %4 = vector.broadcast %3 : vector<64x1xf32> to vector<64x512xf32>
    %5 = arith.mulf %2, %4 : vector<64x512xf32>
    %c0_5 = arith.constant 0 : index
    %c0_6 = arith.constant 0 : index
    %6 = vector.load %arg5[%c0_5, %c0_6] : memref<1x512xf32, #tpu.memory_space<vmem>>, vector<1x512xf32>
    %7 = vector.broadcast %6 : vector<1x512xf32> to vector<64x512xf32>
    %8 = arith.mulf %5, %7 : vector<64x512xf32>
    %9 = tpu.iota {dimensions = array<i32: 1>} : vector<64x512xi32>
    %c0_7 = arith.constant 0 : index
    %c0_8 = arith.constant 0 : index
    %10 = vector.load %arg6[%c0_7, %c0_8] : memref<64x1xi32, #tpu.memory_space<vmem>>, vector<64x1xi32>
    %c512_i32 = arith.constant 512 : i32
    %11 = arith.muli %arg0, %c512_i32 : i32
    %12 = vector.broadcast %11 : i32 to vector<64x1xi32>
    %13 = arith.subi %10, %12 : vector<64x1xi32>
    %14 = vector.broadcast %13 : vector<64x1xi32> to vector<64x512xi32>
    %15 = arith.cmpi eq, %9, %14 : vector<64x512xi32>
    %cst_9 = arith.constant 1.200000e+01 : f32
    %16 = vector.broadcast %cst_9 : f32 to vector<64x512xf32>
    %17 = arith.subf %8, %16 : vector<64x512xf32>
    %18 = arith.select %15, %17, %8 : vector<64x512xi1>, vector<64x512xf32>
    %19 = arith.truncf %18 : vector<64x512xf32> to vector<64x512xbf16>
    %c0_10 = arith.constant 0 : index
    %c0_11 = arith.constant 0 : index
    %20 = vector.load %arg7[%c0_10, %c0_11] : memref<64x512xbf16, #tpu.memory_space<vmem>>, vector<64x512xbf16>
    tpu.vector_store %arg7[%c0_10, %c0_11], %19 {strides = array<i32>} : memref<64x512xbf16, #tpu.memory_space<vmem>>, vector<64x512xbf16>,
    return
  }
  func.func @transform_0(%arg0: i32, %arg1: i32) -> (i32, i32) {
    %c0_i32 = arith.constant 0 : i32
    %c0_i32_0 = arith.constant 0 : i32
    return %arg1, %c0_i32 : i32, i32
  }
  func.func @transform_1(%arg0: i32, %arg1: i32) -> (i32, i32) {
    %c0_i32 = arith.constant 0 : i32
    %c0_i32_0 = arith.constant 0 : i32
    return %c0_i32, %arg0 : i32, i32
  }
  func.func @transform_2(%arg0: i32, %arg1: i32) -> (i32, i32) {
    %c0_i32 = arith.constant 0 : i32
    %c0_i32_0 = arith.constant 0 : i32
    return %arg1, %c0_i32 : i32, i32
  }
  func.func @transform_3(%arg0: i32, %arg1: i32) -> (i32, i32) {
    %c0_i32 = arith.constant 0 : i32
    %c0_i32_0 = arith.constant 0 : i32
    return %c0_i32, %arg0 : i32, i32
  }
  func.func @transform_4(%arg0: i32, %arg1: i32) -> (i32, i32) {
    %c0_i32 = arith.constant 0 : i32
    %c0_i32_0 = arith.constant 0 : i32
    return %arg1, %c0_i32 : i32, i32
  }
  func.func @transform_5(%arg0: i32, %arg1: i32) -> (i32, i32) {
    %c0_i32 = arith.constant 0 : i32
    return %arg1, %arg0 : i32, i32
  }
}

</mosaic_0001>

<bundles_post_ra>
// kernel: tpu_custom_call.1
= control target key start
LH: loop header
LB: loop body
LE: loop exit
PB: predicated region body
PF: predicated region fallthrough
CT: control target
= control target key end

     0   :  { %10 = vsyncpa [#allocation3], 0  ;;  %s1872_s0 = inlined_call_operand.vmem [shape: bf16[64,256], index: 0, kind: input, shape index: {}]   ;;  %s1873_s1 = inlined_call_operand.hbm [shape: bf16[256,512], index: 1, kind: input, shape index: {}]   ;;  %s1874_s2 = inlined_call_operand.vmem [shape: f32[64,1], index: 2, kind: input, shape index: {}]   ;;  %s1875_s3 = inlined_call_operand.vmem [shape: f32[1,512], index: 3, kind: input, shape index: {}]   ;;  %s1876_s4 = inlined_call_operand.vmem [shape: s32[64,1], index: 4, kind: input, shape index: {}]   ;;  %s1877_s5 = inlined_call_operand.hbm [shape: bf16[64,512], index: 5, kind: output, shape index: {}]  }
   0x1   :  { %11 = vsyncpa [#allocation4], 0  ;;  %s18_s20 = sshll.u32 %s1873_s1, 4  ;;  %s1469_s21 = smov [#allocation2]   ;;  %s19_s20 = int_to_ptr.hbm [resolvable:$true] %s18_s20 }
   0x2   :  { %s20_s22 = sshll.u32 %s1469_s21, 4  ;;  %s1470_s23 = smov 256   ;;  %s21_s22 = int_to_ptr.vmem [resolvable:$true] %s20_s22 }
   0x3   :  { %s1471_s24 = smov 16  }
   0x4   :  { %26 = dma.hbm_to_vmem [thread:$0]  %s19_s20, 8192, %s21_s22, [#allocation3], %s1470_s23, %s1470_s23, %s1471_s24  }
   0x5   :  { %1465 = dma.done.wait [#allocation3], 8192  }
   0x6   :  { %1466 = vsyncadd [#allocation3], 4294959104  ;;  %v1163_v0 = vld [vmem:[#allocation2 + $0xe0] sm:$0xf]  ;;  %v1375_v1 = vld [vmem:[#allocation2 + $0xec] sm:$0xf0] }
   0x7   :  { %v1291_v2 = vld [vmem:[#allocation2 + $0x1e0] sm:$0xf]  ;;  %v1164_v3 = vor.u32 %v1375_v1, %v1163_v0  ;;  %v1407_v4 = vld [vmem:[#allocation2 + $0x1ec] sm:$0xf0]  ;;  %v1373_v5 = vld [vmem:[#allocation2 + $0xe4] sm:$0xf] }
   0x8   :  { %v1165_v6 = vld [vmem:[#allocation2 + $0xf0] sm:$0xf0]  ;;  %v1292_v7 = vor.u32 %v1407_v4, %v1291_v2  ;;  %v1405_v9 = vld [vmem:[#allocation2 + $0x1e4] sm:$0xf]  ;;  %v1147_v11 = vld [vmem:[#allocation2 + $0xc0] sm:$0xf] }
   0x9   :  { %v1168_v8 = vor.u32 %v1373_v5, %v1165_v6  ;;  %v1293_v10 = vld [vmem:[#allocation2 + $0x1f0] sm:$0xf0]  ;;  %469 = vmatpush.bf16.msra.mxu0 %v1164_v3  ;;  %v1371_v13 = vld [vmem:[#allocation2 + $0xcc] sm:$0xf0]  ;;  %v1275_v14 = vld [vmem:[#allocation2 + $0x1c0] sm:$0xf] }
   0xa   :  { %v1296_v12 = vor.u32 %v1405_v9, %v1293_v10  ;;  %v1403_v15 = vld [vmem:[#allocation2 + $0x1cc] sm:$0xf0]  ;;  %498 = vmatpush.bf16.msra.mxu1 %v1292_v7  ;;  %v1148_v16 = vor.u32 %v1371_v13, %v1147_v11  ;;  %v1369_v18 = vld [vmem:[#allocation2 + $0xc4] sm:$0xf]  ;;  %v1149_v19 = vld [vmem:[#allocation2 + $0xd0] sm:$0xf0] }
   0xb   :  { %527 = vmatpush.bf16.msra.mxu2 %v1168_v8  ;;  %v1276_v17 = vor.u32 %v1403_v15, %v1275_v14  ;;  %v1401_v20 = vld [vmem:[#allocation2 + $0x1c4] sm:$0xf]  ;;  %v1152_v21 = vor.u32 %v1369_v18, %v1149_v19  ;;  %v1277_v22 = vld [vmem:[#allocation2 + $0x1d0] sm:$0xf0]  ;;  %v1131_v23 = vld [vmem:[#allocation2 + $0xa0] sm:$0xf] }
   0xc   :  { %556 = vmatpush.bf16.msra.mxu3 %v1296_v12  ;;  %v1367_v24 = vld [vmem:[#allocation2 + $0xac] sm:$0xf0]  ;;  %v1280_v25 = vor.u32 %v1401_v20, %v1277_v22  ;;  %v1259_v26 = vld [vmem:[#allocation2 + $0x1a0] sm:$0xf]  ;;  %v1365_v28 = vld [vmem:[#allocation2 + $0xa4] sm:$0xf] }
   0xd   :  { %v1399_v27 = vld [vmem:[#allocation2 + $0x1ac] sm:$0xf0]  ;;  %470 = vmatpush.bf16.msra.mxu0 %v1148_v16  ;;  %v1132_v29 = vor.u32 %v1367_v24, %v1131_v23  ;;  %v1133_v30 = vld [vmem:[#allocation2 + $0xb0] sm:$0xf0]  ;;  %v1397_v31 = vld [vmem:[#allocation2 + $0x1a4] sm:$0xf] }
   0xe   :  { %v1261_v32 = vld [vmem:[#allocation2 + $0x1b0] sm:$0xf0]  ;;  %499 = vmatpush.bf16.msra.mxu1 %v1276_v17  ;;  %v1260_v33 = vor.u32 %v1399_v27, %v1259_v26  ;;  %v1136_v34 = vor.u32 %v1365_v28, %v1133_v30  ;;  %v1115_v35 = vld [vmem:[#allocation2 + $0x80] sm:$0xf]  ;;  %v1363_v36 = vld [vmem:[#allocation2 + $0x8c] sm:$0xf0] }
   0xf   :  { %528 = vmatpush.bf16.msra.mxu2 %v1152_v21  ;;  %v1243_v37 = vld [vmem:[#allocation2 + $0x180] sm:$0xf]  ;;  %v1264_v38 = vor.u32 %v1397_v31, %v1261_v32  ;;  %v1395_v39 = vld [vmem:[#allocation2 + $0x18c] sm:$0xf0]  ;;  %v1361_v40 = vld [vmem:[#allocation2 + $0x84] sm:$0xf]  ;;  %v1116_v44 = vor.u32 %v1363_v36, %v1115_v35 }
  0x10   :  { %557 = vmatpush.bf16.msra.mxu3 %v1280_v25  ;;  %v1117_v41 = vld [vmem:[#allocation2 + $0x90] sm:$0xf0]  ;;  %v1393_v42 = vld [vmem:[#allocation2 + $0x184] sm:$0xf]  ;;  %v1244_v45 = vor.u32 %v1395_v39, %v1243_v37  ;;  %v1099_v47 = vld [vmem:[#allocation2 + $0x60] sm:$0xf] }
  0x11   :  { %v1245_v43 = vld [vmem:[#allocation2 + $0x190] sm:$0xf0]  ;;  %471 = vmatpush.bf16.msra.mxu0 %v1132_v29  ;;  %v1120_v46 = vor.u32 %v1361_v40, %v1117_v41  ;;  %v1359_v48 = vld [vmem:[#allocation2 + $0x6c] sm:$0xf0]  ;;  %v1227_v49 = vld [vmem:[#allocation2 + $0x160] sm:$0xf] }
  0x12   :  { %500 = vmatpush.bf16.msra.mxu1 %v1260_v33  ;;  %v1248_v50 = vor.u32 %v1393_v42, %v1245_v43  ;;  %v1391_v51 = vld [vmem:[#allocation2 + $0x16c] sm:$0xf0]  ;;  %v1357_v52 = vld [vmem:[#allocation2 + $0x64] sm:$0xf]  ;;  %v1101_v53 = vld [vmem:[#allocation2 + $0x70] sm:$0xf0]  ;;  %v1100_v56 = vor.u32 %v1359_v48, %v1099_v47 }
  0x13   :  { %529 = vmatpush.bf16.msra.mxu2 %v1136_v34  ;;  %v1389_v54 = vld [vmem:[#allocation2 + $0x164] sm:$0xf]  ;;  %v1229_v55 = vld [vmem:[#allocation2 + $0x170] sm:$0xf0]  ;;  %v1228_v57 = vor.u32 %v1391_v51, %v1227_v49  ;;  %v1104_v58 = vor.u32 %v1357_v52, %v1101_v53  ;;  %v1083_v59 = vld [vmem:[#allocation2 + $0x40] sm:$0xf] }
  0x14   :  { %558 = vmatpush.bf16.msra.mxu3 %v1264_v38  ;;  %v1355_v60 = vld [vmem:[#allocation2 + $0x4c] sm:$0xf0]  ;;  %v1211_v61 = vld [vmem:[#allocation2 + $0x140] sm:$0xf]  ;;  %v1232_v62 = vor.u32 %v1389_v54, %v1229_v55  ;;  %v1353_v0 = vld [vmem:[#allocation2 + $0x44] sm:$0xf] }
  0x15   :  { %472 = vmatpush.bf16.msra.mxu0 %v1116_v44  ;;  %v1387_v63 = vld [vmem:[#allocation2 + $0x14c] sm:$0xf0]  ;;  %v1085_v1 = vld [vmem:[#allocation2 + $0x50] sm:$0xf0]  ;;  %v1385_v2 = vld [vmem:[#allocation2 + $0x144] sm:$0xf]  ;;  %v1084_v4 = vor.u32 %v1355_v60, %v1083_v59 }
  0x16   :  { %501 = vmatpush.bf16.msra.mxu1 %v1244_v45  ;;  %v1213_v3 = vld [vmem:[#allocation2 + $0x150] sm:$0xf0]  ;;  %v1212_v5 = vor.u32 %v1387_v63, %v1211_v61  ;;  %v1088_v6 = vor.u32 %v1353_v0, %v1085_v1  ;;  %v1067_v7 = vld [vmem:[#allocation2 + $0x20] sm:$0xf]  ;;  %v1351_v8 = vld [vmem:[#allocation2 + $0x2c] sm:$0xf0] }
  0x17   :  { %530 = vmatpush.bf16.msra.mxu2 %v1120_v46  ;;  %v1195_v9 = vld [vmem:[#allocation2 + $0x120] sm:$0xf]  ;;  %v1216_v10 = vor.u32 %v1385_v2, %v1213_v3  ;;  %v1383_v11 = vld [vmem:[#allocation2 + $0x12c] sm:$0xf0]  ;;  %v1349_v12 = vld [vmem:[#allocation2 + $0x24] sm:$0xf]  ;;  %v1068_v17 = vor.u32 %v1351_v8, %v1067_v7 }
  0x18   :  { %559 = vmatpush.bf16.msra.mxu3 %v1248_v50  ;;  %v1069_v13 = vld [vmem:[#allocation2 + $0x30] sm:$0xf0]  ;;  %v1381_v14 = vld [vmem:[#allocation2 + $0x124] sm:$0xf]  ;;  %v1051_v16 = vld [vmem:[#allocation2] sm:$0xf]  ;;  %v1196_v21 = vor.u32 %v1383_v11, %v1195_v9 }
  0x19   :  { %473 = vmatpush.bf16.msra.mxu0 %v1100_v56  ;;  %v1197_v15 = vld [vmem:[#allocation2 + $0x130] sm:$0xf0]  ;;  %v1347_v18 = vld [vmem:[#allocation2 + $0xc] sm:$0xf0]  ;;  %v1179_v19 = vld [vmem:[#allocation2 + $0x100] sm:$0xf]  ;;  %v1072_v22 = vor.u32 %v1349_v12, %v1069_v13 }
  0x1a   :  { %502 = vmatpush.bf16.msra.mxu1 %v1228_v57  ;;  %v1379_v20 = vld [vmem:[#allocation2 + $0x10c] sm:$0xf0]  ;;  %v1345_v23 = vld [vmem:[#allocation2 + $0x4] sm:$0xf]  ;;  %v1053_v24 = vld [vmem:[#allocation2 + $0x10] sm:$0xf0]  ;;  %v1200_v26 = vor.u32 %v1381_v14, %v1197_v15  ;;  %v1052_v34 = vor.u32 %v1347_v18, %v1051_v16 }
  0x1b   :  { %531 = vmatpush.bf16.msra.mxu2 %v1104_v58  ;;  %v701_v25 = vld [vmem:[%s1874_s2] sm:$0xff]  ;;  %v1181_v28 = vld [vmem:[#allocation2 + $0x110] sm:$0xf0]  ;;  %v1472_v30 = vmov 0   ;;  %v1338_v31 = vld [vmem:[%s1872_s0 + $0x4] sm:$0xf0]  ;;  %v1180_v38 = vor.u32 %v1379_v20, %v1179_v19  ;;  %v1056_v39 = vor.u32 %v1345_v23, %v1053_v24 }
  0x1c   :  { %560 = vmatpush.bf16.msra.mxu3 %v1232_v62  ;;  %v1377_v27 = vld [vmem:[#allocation2 + $0x104] sm:$0xf]  ;;  %v1019_v29 = vld [vmem:[%s1872_s0] sm:$0xf]  ;;  %1414 = vset.pattern.permute.xlu0 %v1472_v30  ;;  %v1374_v32 = vld [vmem:[#allocation2 + $0xec] sm:$0xf] }
  0x1d   :  { %474 = vmatpush.bf16.msra.mxu0 %v1084_v4  ;;  %v1173_v33 = vld [vmem:[#allocation2 + $0xf8] sm:$0xf0]  ;;  %711 = vperm.xlu0 %1414, %v701_v25   ;;  %v1406_v35 = vld [vmem:[#allocation2 + $0x1ec] sm:$0xf]  ;;  %v703_v37 = vld [vmem:[%s1874_s2 + $0x10] sm:$0xff]  ;;  %v1184_v42 = vor.u32 %v1377_v27, %v1181_v28  ;;  %v1528_v47 = vor.u32 %v1338_v31, %v1019_v29  ;;  %s1004_s16 = sshll.u32 %s1877_s5, 4  ;;  %s1005_s16 = int_to_ptr.hbm [resolvable:$true] %s1004_s16 }
  0x1e   :  { %503 = vmatpush.bf16.msra.mxu1 %v1212_v5  ;;  %1415 = vset.pattern.permute.xlu1 %v1472_v30  ;;  %v1301_v36 = vld [vmem:[#allocation2 + $0x1f8] sm:$0xf0]  ;;  %v1337_v40 = vld [vmem:[%s1872_s0 + $0x4] sm:$0xf]  ;;  %v1021_v41 = vld [vmem:[%s1872_s0 + $0x8] sm:$0xf0]  ;;  %v1176_v43 = vor.u32 %v1374_v32, %v1173_v33 }
  0x1f   :  { %532 = vmatpush.bf16.msra.mxu2 %v1088_v6  ;;  %1416 = vset.pattern.permute.xlu2 %v1472_v30  ;;  %v1171_v44 = vld [vmem:[#allocation2 + $0xe8] sm:$0xf]  ;;  %v1376_v45 = vld [vmem:[#allocation2 + $0xf4] sm:$0xf0]  ;;  %v1304_v48 = vor.u32 %v1406_v35, %v1301_v36  ;;  %v1370_v50 = vld [vmem:[#allocation2 + $0xcc] sm:$0xf]  ;;  %v1530_v52 = vor.u32 %v1337_v40, %v1021_v41 }
  0x20   :  { %561 = vmatpush.bf16.msra.mxu3 %v1216_v10  ;;  %v1299_v46 = vld [vmem:[#allocation2 + $0x1e8] sm:$0xf]  ;;  %721 = vperm.xlu1 %1415, %v703_v37   ;;  %v1408_v49 = vld [vmem:[#allocation2 + $0x1f4] sm:$0xf0]  ;;  %v1157_v51 = vld [vmem:[#allocation2 + $0xd8] sm:$0xf0]  ;;  %v1172_v55 = vor.u32 %v1376_v45, %v1171_v44 }
  0x21   :  { %475 = vmatpush.bf16.msra.mxu0 %v1068_v17  ;;  %v1402_v53 = vld [vmem:[#allocation2 + $0x1cc] sm:$0xf]  ;;  %v1285_v54 = vld [vmem:[#allocation2 + $0x1d8] sm:$0xf0]  ;;  %v1300_v56 = vor.u32 %v1408_v49, %v1299_v46  ;;  %v1160_v57 = vor.u32 %v1370_v50, %v1157_v51  ;;  %v1155_v58 = vld [vmem:[#allocation2 + $0xc8] sm:$0xf] }
  0x22   :  { %504 = vmatpush.bf16.msra.mxu1 %v1196_v21  ;;  %v1372_v59 = vld [vmem:[#allocation2 + $0xd4] sm:$0xf0]  ;;  %v1283_v60 = vld [vmem:[#allocation2 + $0x1c8] sm:$0xf]  ;;  %v1288_v61 = vor.u32 %v1402_v53, %v1285_v54  ;;  %v1366_v63 = vld [vmem:[#allocation2 + $0xac] sm:$0xf] }
  0x23   :  { %533 = vmatpush.bf16.msra.mxu2 %v1072_v22  ;;  %v1404_v62 = vld [vmem:[#allocation2 + $0x1d4] sm:$0xf0]  ;;  %v1141_v0 = vld [vmem:[#allocation2 + $0xb8] sm:$0xf0]  ;;  %v702_v1 = vld [vmem:[%s1874_s2 + $0x8] sm:$0xff]  ;;  %v1156_v4 = vor.u32 %v1372_v59, %v1155_v58 }
  0x24   :  { %562 = vmatpush.bf16.msra.mxu3 %v1200_v26  ;;  %v1398_v2 = vld [vmem:[#allocation2 + $0x1ac] sm:$0xf]  ;;  %v1269_v3 = vld [vmem:[#allocation2 + $0x1b8] sm:$0xf0]  ;;  %v705_v6 = vld [vmem:[%s1874_s2 + $0x20] sm:$0xff]  ;;  %v1284_v7 = vor.u32 %v1404_v62, %v1283_v60  ;;  %v1144_v8 = vor.u32 %v1366_v63, %v1141_v0 }
  0x25   :  { %476 = vmatpush.bf16.msra.mxu0 %v1052_v34  ;;  %v704_v5 = vld [vmem:[%s1874_s2 + $0x18] sm:$0xff]  ;;  %v1139_v9 = vld [vmem:[#allocation2 + $0xa8] sm:$0xf]  ;;  %716 = vperm.xlu0 %1414, %v702_v1   ;;  %v1272_v12 = vor.u32 %v1398_v2, %v1269_v3  ;;  %v1362_v14 = vld [vmem:[#allocation2 + $0x8c] sm:$0xf] }
  0x26   :  { %505 = vmatpush.bf16.msra.mxu1 %v1180_v38  ;;  %v1368_v10 = vld [vmem:[#allocation2 + $0xb4] sm:$0xf0]  ;;  %v1267_v11 = vld [vmem:[#allocation2 + $0x1a8] sm:$0xf]  ;;  %v1125_v15 = vld [vmem:[#allocation2 + $0x98] sm:$0xf0]  ;;  %731 = vperm.xlu2 %1416, %v705_v6  }
  0x27   :  { %534 = vmatpush.bf16.msra.mxu2 %v1056_v39  ;;  %v1400_v13 = vld [vmem:[#allocation2 + $0x1b4] sm:$0xf0]  ;;  %v1394_v16 = vld [vmem:[#allocation2 + $0x18c] sm:$0xf]  ;;  %v1253_v17 = vld [vmem:[#allocation2 + $0x198] sm:$0xf0]  ;;  %v1140_v18 = vor.u32 %v1368_v10, %v1139_v9  ;;  %v1128_v22 = vor.u32 %v1362_v14, %v1125_v15 }
  0x28   :  { %563 = vmatpush.bf16.msra.mxu3 %v1184_v42  ;;  %477 = vmatmul.bf16.vlgmr.msra.gmra.mxu0 %v1528_v47  ;;  %v1027_v19 = vld [vmem:[%s1872_s0 + $0x10] sm:$0xf]  ;;  %v1340_v20 = vld [vmem:[%s1872_s0 + $0x14] sm:$0xf0]  ;;  %v1268_v21 = vor.u32 %v1400_v13, %v1267_v11  ;;  %v1123_v23 = vld [vmem:[#allocation2 + $0x88] sm:$0xf]  ;;  %v1256_v27 = vor.u32 %v1394_v16, %v1253_v17 }
  0x29   :  { %506 = vmatmul.bf16.vlgmr.msra.gmra.mxu1 %v1530_v52  ;;  %585 = vmatpush.bf16.msrb.mxu0 %v1172_v55  ;;  %v1364_v24 = vld [vmem:[#allocation2 + $0x94] sm:$0xf0]  ;;  %v1251_v25 = vld [vmem:[#allocation2 + $0x188] sm:$0xf]  ;;  %v1339_v26 = vld [vmem:[%s1872_s0 + $0x14] sm:$0xf] }
  0x2a   :  { %535 = vmatmul.bf16.vlgmr.msra.gmra.mxu2 %v1528_v47  ;;  %614 = vmatpush.bf16.msrb.mxu1 %v1300_v56  ;;  %v1396_v28 = vld [vmem:[#allocation2 + $0x194] sm:$0xf0]  ;;  %v1358_v29 = vld [vmem:[#allocation2 + $0x6c] sm:$0xf]  ;;  %v1109_v30 = vld [vmem:[#allocation2 + $0x78] sm:$0xf0]  ;;  %v1124_v36 = vor.u32 %v1364_v24, %v1123_v23 }
  0x2b   :  { %643 = vmatpush.bf16.msrb.mxu2 %v1176_v43  ;;  %564 = vmatmul.bf16.vlgmr.msra.gmra.mxu3 %v1530_v52  ;;  %v707_v31 = vld [vmem:[%s1874_s2 + $0x30] sm:$0xff]  ;;  %v1390_v32 = vld [vmem:[#allocation2 + $0x16c] sm:$0xf]  ;;  %v1237_v33 = vld [vmem:[#allocation2 + $0x178] sm:$0xf0]  ;;  %v1252_v38 = vor.u32 %v1396_v28, %v1251_v25  ;;  %v1112_v39 = vor.u32 %v1358_v29, %v1109_v30  ;;  %v1566_v43 = vor.u32 %v1340_v20, %v1027_v19 }
  0x2c   :  { %672 = vmatpush.bf16.msrb.mxu3 %v1304_v48  ;;  %726 = vperm.xlu1 %1415, %v704_v5   ;;  %v1029_v34 = vld [vmem:[%s1872_s0 + $0x18] sm:$0xf0]  ;;  %v706_v37 = vld [vmem:[%s1874_s2 + $0x28] sm:$0xff]  ;;  %v1360_v41 = vld [vmem:[#allocation2 + $0x74] sm:$0xf0]  ;;  %v1240_v44 = vor.u32 %v1390_v32, %v1237_v33 }
  0x2d   :  { %586 = vmatpush.bf16.msrb.mxu0 %v1156_v4  ;;  %v708_v35 = vld [vmem:[%s1874_s2 + $0x38] sm:$0xff]  ;;  %v1107_v40 = vld [vmem:[#allocation2 + $0x68] sm:$0xf]  ;;  %741 = vperm.xlu0 %1414, %v707_v31   ;;  %v1354_v46 = vld [vmem:[#allocation2 + $0x4c] sm:$0xf]  ;;  %v1568_v49 = vor.u32 %v1339_v26, %v1029_v34 }
  0x2e   :  { %615 = vmatpush.bf16.msrb.mxu1 %v1284_v7  ;;  %v1235_v42 = vld [vmem:[#allocation2 + $0x168] sm:$0xf]  ;;  %v1392_v45 = vld [vmem:[#allocation2 + $0x174] sm:$0xf0]  ;;  %v1093_v48 = vld [vmem:[#allocation2 + $0x58] sm:$0xf0]  ;;  %736 = vperm.xlu2 %1416, %v706_v37   ;;  %v1108_v53 = vor.u32 %v1360_v41, %v1107_v40 }
  0x2f   :  { %644 = vmatpush.bf16.msrb.mxu2 %v1160_v57  ;;  %v1386_v50 = vld [vmem:[#allocation2 + $0x14c] sm:$0xf]  ;;  %v1221_v51 = vld [vmem:[#allocation2 + $0x158] sm:$0xf0]  ;;  %v1236_v54 = vor.u32 %v1392_v45, %v1235_v42  ;;  %v1096_v55 = vor.u32 %v1354_v46, %v1093_v48  ;;  %v1091_v56 = vld [vmem:[#allocation2 + $0x48] sm:$0xf]  ;;  %v823_v46 = vlaneseq }
  0x30   :  { %673 = vmatpush.bf16.msrb.mxu3 %v1288_v61  ;;  %v1356_v57 = vld [vmem:[#allocation2 + $0x54] sm:$0xf0]  ;;  %v1224_v58 = vor.u32 %v1386_v50, %v1221_v51  ;;  %v1219_v59 = vld [vmem:[#allocation2 + $0x148] sm:$0xf]  ;;  %v830_v62 = vld [vmem:[%s1876_s4 + $0x10] sm:$0xff] }
  0x31   :  { %587 = vmatpush.bf16.msrb.mxu0 %v1140_v18  ;;  %v1388_v60 = vld [vmem:[#allocation2 + $0x154] sm:$0xf0]  ;;  %v829_v61 = vld [vmem:[%s1876_s4 + $0x8] sm:$0xff]  ;;  %v828_v63 = vld [vmem:[%s1876_s4] sm:$0xff]  ;;  %v1092_v0 = vor.u32 %v1356_v57, %v1091_v56 }
  0x32   :  { %616 = vmatpush.bf16.msrb.mxu1 %v1268_v21  ;;  %v1350_v1 = vld [vmem:[#allocation2 + $0x2c] sm:$0xf]  ;;  %v1077_v2 = vld [vmem:[#allocation2 + $0x38] sm:$0xf0]  ;;  %v1220_v4 = vor.u32 %v1388_v60, %v1219_v59  ;;  %v1075_v7 = vld [vmem:[#allocation2 + $0x28] sm:$0xf] }
  0x33   :  { %645 = vmatpush.bf16.msrb.mxu2 %v1144_v8  ;;  %v1382_v3 = vld [vmem:[#allocation2 + $0x12c] sm:$0xf]  ;;  %v1080_v5 = vor.u32 %v1350_v1, %v1077_v2  ;;  %v1205_v6 = vld [vmem:[#allocation2 + $0x138] sm:$0xf0]  ;;  %v1352_v9 = vld [vmem:[#allocation2 + $0x34] sm:$0xf0] }
  0x34   :  { %674 = vmatpush.bf16.msrb.mxu3 %v1272_v12  ;;  %746 = vperm.xlu1 %1415, %v708_v35   ;;  %v1208_v8 = vor.u32 %v1382_v3, %v1205_v6  ;;  %v1203_v10 = vld [vmem:[#allocation2 + $0x128] sm:$0xf]  ;;  %v1384_v11 = vld [vmem:[#allocation2 + $0x134] sm:$0xf0]  ;;  %v1346_v12 = vld [vmem:[#allocation2 + $0xc] sm:$0xf]  ;;  %v1076_v15 = vor.u32 %v1352_v9, %v1075_v7 }
  0x35   :  { %588 = vmatpush.bf16.msrb.mxu0 %v1124_v36  ;;  %850 = vperm.xlu0 %1414, %v829_v61   ;;  %v1061_v13 = vld [vmem:[#allocation2 + $0x18] sm:$0xf0]  ;;  %v1378_v14 = vld [vmem:[#allocation2 + $0x10c] sm:$0xf]  ;;  %v1204_v17 = vor.u32 %v1384_v11, %v1203_v10  ;;  %v1059_v19 = vld [vmem:[#allocation2 + $0x8] sm:$0xf] }
  0x36   :  { %617 = vmatpush.bf16.msrb.mxu1 %v1252_v38  ;;  %847 = vperm.xlu2 %1416, %v828_v63   ;;  %v1189_v16 = vld [vmem:[#allocation2 + $0x118] sm:$0xf0]  ;;  %v1064_v18 = vor.u32 %v1346_v12, %v1061_v13  ;;  %v1348_v20 = vld [vmem:[#allocation2 + $0x14] sm:$0xf0]  ;;  %v1035_v24 = vld [vmem:[%s1872_s0 + $0x20] sm:$0xf] }
  0x37   :  { %646 = vmatpush.bf16.msrb.mxu2 %v1128_v22  ;;  %v1192_v21 = vor.u32 %v1378_v14, %v1189_v16  ;;  %v1187_v22 = vld [vmem:[#allocation2 + $0x108] sm:$0xf]  ;;  %v1380_v23 = vld [vmem:[#allocation2 + $0x114] sm:$0xf0]  ;;  %v832_v26 = vld [vmem:[%s1876_s4 + $0x20] sm:$0xff]  ;;  %v1060_v30 = vor.u32 %v1348_v20, %v1059_v19 }
  0x38   :  { %675 = vmatpush.bf16.msrb.mxu3 %v1256_v27  ;;  %482 = vmatmul.bf16.gmra.mxu0 %v1566_v43  ;;  %v1342_v25 = vld [vmem:[%s1872_s0 + $0x24] sm:$0xf0]  ;;  %v1341_v27 = vld [vmem:[%s1872_s0 + $0x24] sm:$0xf]  ;;  %v1037_v28 = vld [vmem:[%s1872_s0 + $0x28] sm:$0xf0]  ;;  %v1188_v31 = vor.u32 %v1380_v23, %v1187_v22 }
  0x39   :  { %511 = vmatmul.bf16.gmra.mxu1 %v1568_v49  ;;  %589 = vmatpush.bf16.msrb.mxu0 %v1108_v53  ;;  %v833_v29 = vld [vmem:[%s1876_s4 + $0x28] sm:$0xff]  ;;  %v1036_v32 = vor.u32 %v1342_v25, %v1035_v24  ;;  %v1040_v33 = vor.u32 %v1341_v27, %v1037_v28  ;;  %v831_v34 = vld [vmem:[%s1876_s4 + $0x18] sm:$0xff]  ;;  %v1043_v36 = vld [vmem:[%s1872_s0 + $0x30] sm:$0xf] }
  0x3a   :  { %540 = vmatmul.bf16.gmra.mxu2 %v1566_v43  ;;  %618 = vmatpush.bf16.msrb.mxu1 %v1236_v54  ;;  %v835_v35 = vld [vmem:[%s1876_s4 + $0x38] sm:$0xff]  ;;  %v1343_v38 = vld [vmem:[%s1872_s0 + $0x34] sm:$0xf] }
  0x3b   :  { %647 = vmatpush.bf16.msrb.mxu2 %v1112_v39  ;;  %569 = vmatmul.bf16.gmra.mxu3 %v1568_v49  ;;  %v1344_v37 = vld [vmem:[%s1872_s0 + $0x34] sm:$0xf0]  ;;  %v1045_v39 = vld [vmem:[%s1872_s0 + $0x38] sm:$0xf0]  ;;  %v834_v42 = vld [vmem:[%s1876_s4 + $0x30] sm:$0xff] }
  0x3c   :  { %676 = vmatpush.bf16.msrb.mxu3 %v1240_v44  ;;  %853 = vperm.xlu1 %1415, %v830_v62   ;;  %v1044_v40 = vor.u32 %v1344_v37, %v1043_v36  ;;  %v1048_v41 = vor.u32 %v1343_v38, %v1045_v39 }
  0x3d   :  { %590 = vmatpush.bf16.msrb.mxu0 %v1092_v0  ;;  %859 = vperm.xlu0 %1414, %v832_v26  }
  0x3e   :  { %619 = vmatpush.bf16.msrb.mxu1 %v1220_v4  ;;  %856 = vperm.xlu2 %1416, %v831_v34  }
  0x3f   :  { %648 = vmatpush.bf16.msrb.mxu2 %v1096_v55 }
  0x40   :  { %677 = vmatpush.bf16.msrb.mxu3 %v1224_v58  ;;  %v1661_v58 = vld [vmem:[%s1875_s3] sm:$0xf]  ;;  %s1473_s3 = smov [#allocation5]  }
  0x41   :  { %591 = vmatpush.bf16.msrb.mxu0 %v1076_v15  ;;  %v1667_v61 = vperm.slane %v1661_v58, 0  ;;  %v1677_v4 = vperm.slane %v1661_v58, 1  ;;  %s1002_s13 = sshll.u32 %s1473_s3, 4  ;;  %s1003_s13 = int_to_ptr.vmem [resolvable:$true] %s1002_s13 }
  0x42   :  { %620 = vmatpush.bf16.msrb.mxu1 %v1204_v17 }
  0x43   :  { %649 = vmatpush.bf16.msrb.mxu2 %v1080_v5 }
  0x44   :  { %678 = vmatpush.bf16.msrb.mxu3 %v1208_v8  ;;  %862 = vperm.xlu1 %1415, %v833_v29  }
  0x45   :  { %592 = vmatpush.bf16.msrb.mxu0 %v1060_v30  ;;  %868 = vperm.xlu0 %1414, %v835_v35  }
  0x46   :  { %621 = vmatpush.bf16.msrb.mxu1 %v1188_v31  ;;  %865 = vperm.xlu2 %1416, %v834_v42  }
  0x47   :  { %650 = vmatpush.bf16.msrb.mxu2 %v1064_v18 }
  0x48   :  { %679 = vmatpush.bf16.msrb.mxu3 %v1192_v21  ;;  %487 = vmatmul.bf16.gmra.mxu0 %v1036_v32 }
  0x49   :  { %516 = vmatmul.bf16.gmra.mxu1 %v1040_v33 }
  0x4a   :  { %545 = vmatmul.bf16.gmra.mxu2 %v1036_v32 }
  0x4b   :  { %574 = vmatmul.bf16.gmra.mxu3 %v1040_v33 }
  0x58   :  { %492 = vmatmul.bf16.gmra.mxu0 %v1044_v40 }
  0x59   :  { %521 = vmatmul.bf16.gmra.mxu1 %v1048_v41 }
  0x5a   :  { %550 = vmatmul.bf16.gmra.mxu2 %v1044_v40 }
  0x5b   :  { %579 = vmatmul.bf16.gmra.mxu3 %v1048_v41 }
  0x68   :  { %593 = vmatmul.bf16.vlgmr.msrb.gmra.mxu0 %v1528_v47 }
  0x69   :  { %622 = vmatmul.bf16.vlgmr.msrb.gmra.mxu1 %v1530_v52 }
  0x6a   :  { %651 = vmatmul.bf16.vlgmr.msrb.gmra.mxu2 %v1528_v47  ;;  %v1634_v47 = vand.u32 127, %v823_v46 }
  0x6b   :  { %680 = vmatmul.bf16.vlgmr.msrb.gmra.mxu3 %v1530_v52 }
  0x6c   :  { %v1641_v50 = vadd.s32 256, %v1634_v47  ;;  %v1680_v7 = vadd.s32 128, %v1634_v47 }
  0x78   :  { %598 = vmatmul.bf16.gmra.mxu0 %v1566_v43 }
  0x79   :  { %627 = vmatmul.bf16.gmra.mxu1 %v1568_v49 }
  0x7a   :  { %656 = vmatmul.bf16.gmra.mxu2 %v1566_v43  ;;  %v1644_v43 = vadd.s32 384, %v1634_v47 }
  0x7b   :  { %685 = vmatmul.bf16.gmra.mxu3 %v1568_v49 }
  0x80   :  { %v1630_v44 = vpop.permute.xlu2 %731 }
  0x88   :  { %603 = vmatmul.bf16.gmra.mxu0 %v1036_v32  ;;  %v1632_v45 = vpop.permute.xlu2 %736 }
  0x89   :  { %632 = vmatmul.bf16.gmra.mxu1 %v1040_v33 }
  0x8a   :  { %661 = vmatmul.bf16.gmra.mxu2 %v1036_v32 }
  0x8b   :  { %690 = vmatmul.bf16.gmra.mxu3 %v1040_v33 }
  0x8f   :  { %v1636_v52 = vpop.permute.xlu0 %711 }
  0x90   :  { %v1646_v49 = vpop.permute.xlu2 %847 }
  0x91   :  { %vm872_vm0 = vcmp.eq.s32.totalorder %v1641_v50, %v1646_v49  ;;  %vm873_vm1 = vcmp.eq.s32.totalorder %v1644_v43, %v1646_v49  ;;  %vm870_vm8 = vcmp.eq.s32.totalorder %v1634_v47, %v1646_v49  ;;  %vm871_vm9 = vcmp.eq.s32.totalorder %v1680_v7, %v1646_v49 }
  0x92   :  { %v1638_v48 = vpop.permute.xlu1 %721 }
  0x97   :  { %v1652_v51 = vpop.permute.xlu0 %716 }
  0x98   :  { %608 = vmatmul.bf16.gmra.mxu0 %v1044_v40  ;;  %v1669_v62 = vpop.permute.xlu2 %856 }
  0x99   :  { %637 = vmatmul.bf16.gmra.mxu1 %v1048_v41  ;;  %vm884_vm2 = vcmp.eq.s32.totalorder %v1641_v50, %v1669_v62  ;;  %vm885_vm3 = vcmp.eq.s32.totalorder %v1644_v43, %v1669_v62 }
  0x9a   :  { %666 = vmatmul.bf16.gmra.mxu2 %v1044_v40 }
  0x9b   :  { %695 = vmatmul.bf16.gmra.mxu3 %v1048_v41 }
  0x9e   :  { %v1654_v53 = vpop.permute.xlu1 %726 }
  0x9f   :  { %v1656_v56 = vpop.permute.xlu0 %741 }
  0xa5   :  { %v478_v54 = vpop.f32.mrf.mxu0 }
  0xa6   :  { %v507_v55 = vpop.f32.mrf.mxu1  ;;  %v1663_v59 = vpop.permute.xlu1 %746 }
  0xa7   :  { %v508_v57 = vadd.f32 %v507_v55, %v478_v54  ;;  %v1682_v8 = vpop.permute.xlu0 %850 }
  0xa8   :  { %vm876_vm4 = vcmp.eq.s32.totalorder %v1641_v50, %v1682_v8  ;;  %vm877_vm5 = vcmp.eq.s32.totalorder %v1644_v43, %v1682_v8  ;;  %vm874_vm12 = vcmp.eq.s32.totalorder %v1634_v47, %v1682_v8  ;;  %vm875_vm13 = vcmp.eq.s32.totalorder %v1680_v7, %v1682_v8 }
  0xa9   :  { %v749_v60 = vmul.f32 %v1636_v52, %v508_v57 }
  0xab   :  { %v791_v2 = vmul.f32 %v1667_v61, %v749_v60 }
  0xad   :  { %v536_v63 = vpop.f32.mrf.mxu2  ;;  %v480_v1 = vpop.f32.mrf.mxu0  ;;  %v1305_v11 = vadd.f32 -12.0, %v791_v2 }
  0xae   :  { %v565_v0 = vpop.f32.mrf.mxu3  ;;  %v509_v5 = vpop.f32.mrf.mxu1 }
  0xaf   :  { %v566_v3 = vadd.f32 %v565_v0, %v536_v63  ;;  %v510_v6 = vadd.f32 %v509_v5, %v480_v1  ;;  %v1689_v10 = vpop.permute.xlu1 %853  ;;  %v934_v19 = vsel %vm870_vm8, %v1305_v11, %v791_v2  ;;  %v1702_v25 = vpop.permute.xlu0 %859 }
  0xb0   :  { %vm880_vm6 = vcmp.eq.s32.totalorder %v1641_v50, %v1689_v10  ;;  %vm881_vm7 = vcmp.eq.s32.totalorder %v1644_v43, %v1689_v10  ;;  %vm888_vm10 = vcmp.eq.s32.totalorder %v1641_v50, %v1702_v25  ;;  %vm889_vm11 = vcmp.eq.s32.totalorder %v1644_v43, %v1702_v25  ;;  %v1729_v63 = vpop.permute.xlu2 %865 }
  0xb1   :  { %v750_v9 = vmul.f32 %v1636_v52, %v566_v3  ;;  %v753_v13 = vmul.f32 %v1652_v51, %v510_v6  ;;  %vm878_vm8 = vcmp.eq.s32.totalorder %v1634_v47, %v1689_v10 }
  0xb3   :  { %v792_v12 = vmul.f32 %v1677_v4, %v750_v9  ;;  %v795_v18 = vmul.f32 %v1667_v61, %v753_v13 }
  0xb5   :  { %v1306_v14 = vadd.f32 -12.0, %v792_v12  ;;  %v538_v15 = vpop.f32.mrf.mxu2  ;;  %v483_v17 = vpop.f32.mrf.mxu0  ;;  %v1309_v27 = vadd.f32 -12.0, %v795_v18 }
  0xb6   :  { %v567_v16 = vpop.f32.mrf.mxu3  ;;  %v512_v22 = vpop.f32.mrf.mxu1 }
  0xb7   :  { %v935_v20 = vsel %vm871_vm9, %v1306_v14, %v792_v12  ;;  %v568_v21 = vadd.f32 %v567_v16, %v538_v15  ;;  %v513_v24 = vadd.f32 %v512_v22, %v483_v17  ;;  %v1715_v30 = vpop.permute.xlu1 %862  ;;  %v938_v35 = vsel %vm874_vm12, %v1309_v27, %v795_v18  ;;  %v1743_v17 = vpop.permute.xlu0 %868 }
  0xb8   :  { %v966_v23 = vpack.c.bf16 %v935_v20, %v934_v19  ;;  %vm892_vm14 = vcmp.eq.s32.totalorder %v1641_v50, %v1715_v30  ;;  %vm893_vm15 = vcmp.eq.s32.totalorder %v1644_v43, %v1715_v30  ;;  %vm879_vm9 = vcmp.eq.s32.totalorder %v1680_v7, %v1689_v10 }
  0xb9   :  { %v754_v26 = vmul.f32 %v1652_v51, %v568_v21  ;;  %v757_v29 = vmul.f32 %v1638_v48, %v513_v24  ;;  %vm882_vm12 = vcmp.eq.s32.totalorder %v1634_v47, %v1669_v62 }
  0xba   :  { %982 = vst [vmem:[#allocation5] sm:$0xff] %v966_v23 }
  0xbb   :  { %v796_v28 = vmul.f32 %v1677_v4, %v754_v26  ;;  %v799_v37 = vmul.f32 %v1667_v61, %v757_v29 }
  0xbd   :  { %v1310_v31 = vadd.f32 -12.0, %v796_v28  ;;  %v541_v32 = vpop.f32.mrf.mxu2  ;;  %v485_v34 = vpop.f32.mrf.mxu0  ;;  %v1313_v46 = vadd.f32 -12.0, %v799_v37 }
  0xbe   :  { %v570_v33 = vpop.f32.mrf.mxu3  ;;  %v514_v39 = vpop.f32.mrf.mxu1 }
  0xbf   :  { %v939_v36 = vsel %vm875_vm13, %v1310_v31, %v796_v28  ;;  %v571_v38 = vadd.f32 %v570_v33, %v541_v32  ;;  %v515_v41 = vadd.f32 %v514_v39, %v485_v34  ;;  %v942_v3 = vsel %vm878_vm8, %v1313_v46, %v799_v37 }
  0xc0   :  { %v968_v40 = vpack.c.bf16 %v939_v36, %v938_v35  ;;  %vm883_vm13 = vcmp.eq.s32.totalorder %v1680_v7, %v1669_v62  ;;  %vm891_vm8 = vcmp.eq.s32.totalorder %v1680_v7, %v1715_v30 }
  0xc1   :  { %v758_v42 = vmul.f32 %v1638_v48, %v571_v38  ;;  %v761_v55 = vmul.f32 %v1654_v53, %v515_v41 }
  0xc2   :  { %984 = vst [vmem:[#allocation5 + $0x10] sm:$0xff] %v968_v40 }
  0xc3   :  { %v800_v54 = vmul.f32 %v1677_v4, %v758_v42  ;;  %v803_v2 = vmul.f32 %v1667_v61, %v761_v55 }
  0xc5   :  { %v1314_v57 = vadd.f32 -12.0, %v800_v54  ;;  %v543_v60 = vpop.f32.mrf.mxu2  ;;  %v488_v1 = vpop.f32.mrf.mxu0  ;;  %v1317_v14 = vadd.f32 -12.0, %v803_v2 }
  0xc6   :  { %v572_v0 = vpop.f32.mrf.mxu3  ;;  %v517_v9 = vpop.f32.mrf.mxu1 }
  0xc7   :  { %v943_v5 = vsel %vm879_vm9, %v1314_v57, %v800_v54  ;;  %v573_v6 = vadd.f32 %v572_v0, %v543_v60  ;;  %v518_v12 = vadd.f32 %v517_v9, %v488_v1  ;;  %v946_v22 = vsel %vm882_vm12, %v1317_v14, %v803_v2 }
  0xc8   :  { %v970_v11 = vpack.c.bf16 %v943_v5, %v942_v3  ;;  %vm886_vm9 = vcmp.eq.s32.totalorder %v1634_v47, %v1702_v25  ;;  %vm887_vm12 = vcmp.eq.s32.totalorder %v1680_v7, %v1702_v25 }
  0xc9   :  { %v762_v13 = vmul.f32 %v1654_v53, %v573_v6  ;;  %v765_v16 = vmul.f32 %v1630_v44, %v518_v12 }
  0xca   :  { %986 = vst [vmem:[#allocation5 + $0x20] sm:$0xff] %v970_v11 }
  0xcb   :  { %v804_v15 = vmul.f32 %v1677_v4, %v762_v13  ;;  %v807_v24 = vmul.f32 %v1667_v61, %v765_v16 }
  0xcd   :  { %v1318_v18 = vadd.f32 -12.0, %v804_v15  ;;  %v546_v19 = vpop.f32.mrf.mxu2  ;;  %v490_v21 = vpop.f32.mrf.mxu0  ;;  %v1321_v32 = vadd.f32 -12.0, %v807_v24 }
  0xce   :  { %v575_v20 = vpop.f32.mrf.mxu3  ;;  %v519_v27 = vpop.f32.mrf.mxu1 }
  0xcf   :  { %v947_v23 = vsel %vm883_vm13, %v1318_v18, %v804_v15  ;;  %v576_v26 = vadd.f32 %v575_v20, %v546_v19  ;;  %v520_v29 = vadd.f32 %v519_v27, %v490_v21  ;;  %v950_v40 = vsel %vm886_vm9, %v1321_v32, %v807_v24 }
  0xd0   :  { %v972_v28 = vpack.c.bf16 %v947_v23, %v946_v22  ;;  %vm890_vm13 = vcmp.eq.s32.totalorder %v1634_v47, %v1715_v30  ;;  %vm894_vm9 = vcmp.eq.s32.totalorder %v1634_v47, %v1729_v63 }
  0xd1   :  { %v766_v31 = vmul.f32 %v1630_v44, %v576_v26  ;;  %v769_v34 = vmul.f32 %v1632_v45, %v520_v29 }
  0xd2   :  { %988 = vst [vmem:[#allocation5 + $0x30] sm:$0xff] %v972_v28 }
  0xd3   :  { %v808_v33 = vmul.f32 %v1677_v4, %v766_v31  ;;  %v811_v39 = vmul.f32 %v1667_v61, %v769_v34 }
  0xd5   :  { %v1322_v35 = vadd.f32 -12.0, %v808_v33  ;;  %v548_v36 = vpop.f32.mrf.mxu2  ;;  %v493_v38 = vpop.f32.mrf.mxu0  ;;  %v1325_v60 = vadd.f32 -12.0, %v811_v39 }
  0xd6   :  { %v577_v37 = vpop.f32.mrf.mxu3  ;;  %v522_v46 = vpop.f32.mrf.mxu1 }
  0xd7   :  { %v951_v41 = vsel %vm887_vm12, %v1322_v35, %v808_v33  ;;  %v578_v42 = vadd.f32 %v577_v37, %v548_v36  ;;  %v523_v55 = vadd.f32 %v522_v46, %v493_v38  ;;  %v954_v9 = vsel %vm890_vm13, %v1325_v60, %v811_v39 }
  0xd8   :  { %v974_v54 = vpack.c.bf16 %v951_v41, %v950_v40  ;;  %v1775_v35 = vperm.slane %v1661_v58, 2  ;;  %vm898_vm12 = vcmp.eq.s32.totalorder %v1634_v47, %v1743_v17  ;;  %vm899_vm13 = vcmp.eq.s32.totalorder %v1680_v7, %v1743_v17 }
  0xd9   :  { %v770_v57 = vmul.f32 %v1632_v45, %v578_v42  ;;  %v773_v1 = vmul.f32 %v1656_v56, %v523_v55 }
  0xda   :  { %990 = vst [vmem:[#allocation5 + $0x40] sm:$0xff] %v974_v54 }
  0xdb   :  { %v812_v0 = vmul.f32 %v1677_v4, %v770_v57  ;;  %v815_v12 = vmul.f32 %v1667_v61, %v773_v1 }
  0xdd   :  { %v1326_v2 = vadd.f32 -12.0, %v812_v0  ;;  %v551_v3 = vpop.f32.mrf.mxu2  ;;  %v495_v6 = vpop.f32.mrf.mxu0  ;;  %v1329_v19 = vadd.f32 -12.0, %v815_v12 }
  0xde   :  { %v580_v5 = vpop.f32.mrf.mxu3  ;;  %v524_v14 = vpop.f32.mrf.mxu1 }
  0xdf   :  { %v955_v11 = vsel %vm891_vm8, %v1326_v2, %v812_v0  ;;  %v581_v13 = vadd.f32 %v580_v5, %v551_v3  ;;  %v525_v16 = vadd.f32 %v524_v14, %v495_v6  ;;  %vm895_vm8 = vcmp.eq.s32.totalorder %v1680_v7, %v1729_v63 }
  0xe0   :  { %v976_v15 = vpack.c.bf16 %v955_v11, %v954_v9  ;;  %v958_v28 = vsel %vm894_vm9, %v1329_v19, %v815_v12  ;;  %v1786_v0 = vperm.slane %v1661_v58, 3 }
  0xe1   :  { %v774_v18 = vmul.f32 %v1656_v56, %v581_v13  ;;  %v777_v21 = vmul.f32 %v1663_v59, %v525_v16 }
  0xe2   :  { %992 = vst [vmem:[#allocation5 + $0x50] sm:$0xff] %v976_v15 }
  0xe3   :  { %v816_v20 = vmul.f32 %v1677_v4, %v774_v18  ;;  %v819_v27 = vmul.f32 %v1667_v61, %v777_v21 }
  0xe5   :  { %v1330_v22 = vadd.f32 -12.0, %v816_v20  ;;  %v553_v23 = vpop.f32.mrf.mxu2  ;;  %v594_v26 = vpop.f32.mrf.mxu0  ;;  %v1333_v38 = vadd.f32 -12.0, %v819_v27 }
  0xe6   :  { %v582_v24 = vpop.f32.mrf.mxu3  ;;  %v623_v32 = vpop.f32.mrf.mxu1 }
  0xe7   :  { %v959_v29 = vsel %vm895_vm8, %v1330_v22, %v816_v20  ;;  %v583_v31 = vadd.f32 %v582_v24, %v553_v23  ;;  %v624_v34 = vadd.f32 %v623_v32, %v594_v26  ;;  %v962_v55 = vsel %vm898_vm12, %v1333_v38, %v819_v27 }
  0xe8   :  { %v978_v33 = vpack.c.bf16 %v959_v29, %v958_v28 }
  0xe9   :  { %v778_v36 = vmul.f32 %v1663_v59, %v583_v31  ;;  %v751_v37 = vmul.f32 %v1636_v52, %v624_v34 }
  0xea   :  { %994 = vst [vmem:[#allocation5 + $0x60] sm:$0xff] %v978_v33 }
  0xeb   :  { %v820_v39 = vmul.f32 %v1677_v4, %v778_v36  ;;  %v793_v61 = vmul.f32 %v1775_v35, %v751_v37 }
  0xed   :  { %v1334_v40 = vadd.f32 -12.0, %v820_v39  ;;  %v652_v41 = vpop.f32.mrf.mxu2  ;;  %v1307_v42 = vadd.f32 -12.0, %v793_v61  ;;  %v596_v54 = vpop.f32.mrf.mxu0 }
  0xee   :  { %v681_v46 = vpop.f32.mrf.mxu3  ;;  %v625_v4 = vpop.f32.mrf.mxu1 }
  0xef   :  { %v963_v57 = vsel %vm899_vm13, %v1334_v40, %v820_v39  ;;  %v682_v60 = vadd.f32 %v681_v46, %v652_v41  ;;  %v936_v47 = vsel %vm872_vm0, %v1307_v42, %v793_v61  ;;  %v626_v7 = vadd.f32 %v625_v4, %v596_v54 }
  0xf0   :  { %v980_v1 = vpack.c.bf16 %v963_v57, %v962_v55  ;;  %vm1878_vm0 = vcmp.eq.s32.totalorder %v1641_v50, %v1729_v63 }
  0xf1   :  { %v752_v2 = vmul.f32 %v1636_v52, %v682_v60  ;;  %v755_v3 = vmul.f32 %v1652_v51, %v626_v7 }
  0xf2   :  { %996 = vst [vmem:[#allocation5 + $0x70] sm:$0xff] %v980_v1 }
  0xf3   :  { %v794_v5 = vmul.f32 %v1786_v0, %v752_v2  ;;  %v797_v6 = vmul.f32 %v1775_v35, %v755_v3 }
  0xf5   :  { %v1308_v9 = vadd.f32 -12.0, %v794_v5  ;;  %v654_v11 = vpop.f32.mrf.mxu2  ;;  %v1311_v58 = vadd.f32 -12.0, %v797_v6  ;;  %v599_v13 = vpop.f32.mrf.mxu0 }
  0xf6   :  { %v683_v12 = vpop.f32.mrf.mxu3  ;;  %v628_v16 = vpop.f32.mrf.mxu1 }
  0xf7   :  { %v937_v14 = vsel %vm873_vm1, %v1308_v9, %v794_v5  ;;  %v684_v15 = vadd.f32 %v683_v12, %v654_v11  ;;  %v940_v52 = vsel %vm876_vm4, %v1311_v58, %v797_v6  ;;  %v629_v19 = vadd.f32 %v628_v16, %v599_v13 }
  0xf8   :  { %v967_v18 = vpack.c.bf16 %v937_v14, %v936_v47  ;;  %vm1879_vm1 = vcmp.eq.s32.totalorder %v1644_v43, %v1729_v63 }
  0xf9   :  { %v756_v20 = vmul.f32 %v1652_v51, %v684_v15  ;;  %v759_v21 = vmul.f32 %v1638_v48, %v629_v19 }
  0xfa   :  { %983 = vst [vmem:[#allocation5 + $0x8] sm:$0xff] %v967_v18 }
  0xfb   :  { %v798_v22 = vmul.f32 %v1786_v0, %v756_v20  ;;  %v801_v23 = vmul.f32 %v1775_v35, %v759_v21 }
  0xfd   :  { %v1312_v24 = vadd.f32 -12.0, %v798_v22  ;;  %v657_v49 = vpop.f32.mrf.mxu2  ;;  %v1315_v26 = vadd.f32 -12.0, %v801_v23  ;;  %v601_v28 = vpop.f32.mrf.mxu0 }
  0xfe   :  { %v686_v27 = vpop.f32.mrf.mxu3  ;;  %v630_v32 = vpop.f32.mrf.mxu1 }
  0xff   :  { %v941_v29 = vsel %vm877_vm5, %v1312_v24, %v798_v22  ;;  %v687_v31 = vadd.f32 %v686_v27, %v657_v49  ;;  %v944_v51 = vsel %vm880_vm6, %v1315_v26, %v801_v23  ;;  %v631_v34 = vadd.f32 %v630_v32, %v601_v28 }
 0x100   :  { %v969_v33 = vpack.c.bf16 %v941_v29, %v940_v52 }
 0x101   :  { %v760_v36 = vmul.f32 %v1638_v48, %v687_v31  ;;  %v763_v37 = vmul.f32 %v1654_v53, %v631_v34 }
 0x102   :  { %985 = vst [vmem:[#allocation5 + $0x18] sm:$0xff] %v969_v33 }
 0x103   :  { %v802_v38 = vmul.f32 %v1786_v0, %v760_v36  ;;  %v805_v39 = vmul.f32 %v1775_v35, %v763_v37 }
 0x105   :  { %v1316_v61 = vadd.f32 -12.0, %v802_v38  ;;  %v659_v8 = vpop.f32.mrf.mxu2  ;;  %v1319_v40 = vadd.f32 -12.0, %v805_v39  ;;  %v604_v42 = vpop.f32.mrf.mxu0 }
 0x106   :  { %v688_v41 = vpop.f32.mrf.mxu3  ;;  %v633_v55 = vpop.f32.mrf.mxu1 }
 0x107   :  { %v945_v46 = vsel %vm881_vm7, %v1316_v61, %v802_v38  ;;  %v689_v54 = vadd.f32 %v688_v41, %v659_v8  ;;  %v948_v48 = vsel %vm884_vm2, %v1319_v40, %v805_v39  ;;  %v634_v60 = vadd.f32 %v633_v55, %v604_v42 }
 0x108   :  { %v971_v57 = vpack.c.bf16 %v945_v46, %v944_v51  ;;  %vm1880_vm2 = vcmp.eq.s32.totalorder %v1641_v50, %v1743_v17 }
 0x109   :  { %v764_v4 = vmul.f32 %v1654_v53, %v689_v54  ;;  %v767_v1 = vmul.f32 %v1630_v44, %v634_v60 }
 0x10a   :  { %987 = vst [vmem:[#allocation5 + $0x28] sm:$0xff] %v971_v57 }
 0x10b   :  { %v806_v47 = vmul.f32 %v1786_v0, %v764_v4  ;;  %v809_v7 = vmul.f32 %v1775_v35, %v767_v1 }
 0x10d   :  { %v1320_v2 = vadd.f32 -12.0, %v806_v47  ;;  %v662_v10 = vpop.f32.mrf.mxu2  ;;  %v1323_v3 = vadd.f32 -12.0, %v809_v7  ;;  %v606_v6 = vpop.f32.mrf.mxu0 }
 0x10e   :  { %v691_v5 = vpop.f32.mrf.mxu3  ;;  %v635_v58 = vpop.f32.mrf.mxu1 }
 0x10f   :  { %v949_v9 = vsel %vm885_vm3, %v1320_v2, %v806_v47  ;;  %v692_v11 = vadd.f32 %v691_v5, %v662_v10  ;;  %v952_v53 = vsel %vm888_vm10, %v1323_v3, %v809_v7  ;;  %v636_v13 = vadd.f32 %v635_v58, %v606_v6 }
 0x110   :  { %v973_v12 = vpack.c.bf16 %v949_v9, %v948_v48  ;;  %vm1881_vm3 = vcmp.eq.s32.totalorder %v1644_v43, %v1743_v17 }
 0x111   :  { %v768_v14 = vmul.f32 %v1630_v44, %v692_v11  ;;  %v771_v15 = vmul.f32 %v1632_v45, %v636_v13 }
 0x112   :  { %989 = vst [vmem:[#allocation5 + $0x38] sm:$0xff] %v973_v12 }
 0x113   :  { %v810_v16 = vmul.f32 %v1786_v0, %v768_v14  ;;  %v813_v18 = vmul.f32 %v1775_v35, %v771_v15 }
 0x115   :  { %v1324_v52 = vadd.f32 -12.0, %v810_v16  ;;  %v664_v62 = vpop.f32.mrf.mxu2  ;;  %v1327_v19 = vadd.f32 -12.0, %v813_v18  ;;  %v609_v21 = vpop.f32.mrf.mxu0 }
 0x116   :  { %v693_v20 = vpop.f32.mrf.mxu3  ;;  %v638_v24 = vpop.f32.mrf.mxu1 }
 0x117   :  { %v953_v22 = vsel %vm889_vm11, %v1324_v52, %v810_v16  ;;  %v694_v23 = vadd.f32 %v693_v20, %v664_v62  ;;  %v956_v44 = vsel %vm892_vm14, %v1327_v19, %v813_v18  ;;  %v639_v26 = vadd.f32 %v638_v24, %v609_v21 }
 0x118   :  { %v975_v49 = vpack.c.bf16 %v953_v22, %v952_v53 }
 0x119   :  { %v772_v27 = vmul.f32 %v1632_v45, %v694_v23  ;;  %v775_v28 = vmul.f32 %v1656_v56, %v639_v26 }
 0x11a   :  { %991 = vst [vmem:[#allocation5 + $0x48] sm:$0xff] %v975_v49 }
 0x11b   :  { %v814_v29 = vmul.f32 %v1786_v0, %v772_v27  ;;  %v817_v31 = vmul.f32 %v1775_v35, %v775_v28 }
 0x11d   :  { %v1328_v32 = vadd.f32 -12.0, %v814_v29  ;;  %v667_v25 = vpop.f32.mrf.mxu2  ;;  %v1331_v33 = vadd.f32 -12.0, %v817_v31  ;;  %v611_v34 = vpop.f32.mrf.mxu0 }
 0x11e   :  { %v696_v51 = vpop.f32.mrf.mxu3  ;;  %v640_v38 = vpop.f32.mrf.mxu1 }
 0x11f   :  { %v957_v36 = vsel %vm893_vm15, %v1328_v32, %v814_v29  ;;  %v697_v37 = vadd.f32 %v696_v51, %v667_v25  ;;  %v960_v45 = vsel %vm1878_vm0, %v1331_v33, %v817_v31  ;;  %v641_v61 = vadd.f32 %v640_v38, %v611_v34 }
 0x120   :  { %v977_v39 = vpack.c.bf16 %v957_v36, %v956_v44 }
 0x121   :  { %v776_v8 = vmul.f32 %v1656_v56, %v697_v37  ;;  %v779_v40 = vmul.f32 %v1663_v59, %v641_v61 }
 0x122   :  { %993 = vst [vmem:[#allocation5 + $0x58] sm:$0xff] %v977_v39 }
 0x123   :  { %v818_v41 = vmul.f32 %v1786_v0, %v776_v8  ;;  %v821_v42 = vmul.f32 %v1775_v35, %v779_v40 }
 0x125   :  { %v1332_v46 = vadd.f32 -12.0, %v818_v41  ;;  %v669_v30 = vpop.f32.mrf.mxu2  ;;  %v1335_v54 = vadd.f32 -12.0, %v821_v42 }
 0x126   :  { %v698_v55 = vpop.f32.mrf.mxu3 }
 0x127   :  { %v961_v57 = vsel %vm1879_vm1, %v1332_v46, %v818_v41  ;;  %v699_v48 = vadd.f32 %v698_v55, %v669_v30  ;;  %v964_v56 = vsel %vm1880_vm2, %v1335_v54, %v821_v42 }
 0x128   :  { %v979_v60 = vpack.c.bf16 %v961_v57, %v960_v45 }
 0x129   :  { %v780_v4 = vmul.f32 %v1663_v59, %v699_v48 }
 0x12a   :  { %995 = vst [vmem:[#allocation5 + $0x68] sm:$0xff] %v979_v60 }
 0x12b   :  { %v822_v1 = vmul.f32 %v1786_v0, %v780_v4 }
 0x12d   :  { %v1336_v35 = vadd.f32 -12.0, %v822_v1 }
 0x12f   :  { %v965_v63 = vsel %vm1881_vm3, %v1336_v35, %v822_v1 }
 0x130   :  { %v981_v47 = vpack.c.bf16 %v965_v63, %v964_v56 }
 0x132   :  { %997 = vst [vmem:[#allocation5 + $0x78] sm:$0xff] %v981_v47 }
 0x133   :  { %1010 = dma.vmem_to_hbm [thread:$0]  %s1003_s13, 2048, %s1005_s16, [#allocation4], %s1470_s23, %s1470_s23, %s1471_s24  }
 0x134   :  { %1467 = dma.done.wait [#allocation4], 2048  }
 0x135   :  { %1468 = vsyncadd [#allocation4], 4294965248 }
 0x136   :  { %1015 = vsyncpa [#allocation3], 1 }
 0x137   :  { %1016 = vsyncpa [#allocation4], 1 }

</bundles_post_ra>
